<compile_context>
chip_gen: v7x
topology: tpu7x:2x2x1
jax: 0.10.0
libtpu: 0.0.40
codegen_flags: <defaults>
</compile_context>

<pallas_src>
import jax
import jax.numpy as jnp
from jax.experimental import pallas as pl
from jax.experimental.pallas import tpu as pltpu


def _copy_kernel(x_ref, o_ref):
    # Identity copy of the current (tile_rows, lane) block.
    o_ref[...] = x_ref[...]


# ~1 MiB per block: with auto double-buffering (2 in + 2 out blocks) this is
# ~4 MiB of VMEM, comfortably within the scoped default on every generation
# (v5e 16 MiB, v6e 32 MiB, v7x 32 MiB scoped / 64 MiB physical) while already
# sitting on the ~85% HBM-roofline plateau for a pure copy.
_TARGET_BLOCK_BYTES = 1 << 20

# Minimum second-to-last (sublane) multiple per element width so vld/vst stay
# full-width and unmasked in the packed layout.
_SUBLANE_MIN = {4: 8, 2: 16, 1: 32}


def _pallas_flat_copy(flat: jax.Array) -> jax.Array:
    """Copy a 1-D contiguous buffer through a Pallas kernel (order/dtype kept)."""
    n = flat.shape[0]
    itemsize = flat.dtype.itemsize
    sub_min = _SUBLANE_MIN.get(itemsize, 8)

    # Widest lane dimension that divides the buffer -> fewer, larger,
    # unmasked stores / DMA descriptors (largest single mem-bound lever).
    lane = None
    for cand in (2048, 1024, 512, 256, 128):
        if n % cand == 0:
            lane = cand
            break
    if lane is None:
        # Ragged buffer: a view is metadata-only anyway -- do not pay for a
        # pad + copy + slice round trip (3x HBM traffic) just to run a kernel.
        return flat

    rows = n // lane
    x2d = flat.reshape(rows, lane)  # metadata-only (contiguous row-major)

    if rows <= sub_min or rows % sub_min != 0:
        # Tiny or ragged leading axis: one full block (block dim == array dim
        # is always legal, regardless of the (8, 128) divisibility rule).
        tile_rows = rows
    else:
        target_rows = max(sub_min, _TARGET_BLOCK_BYTES // (lane * itemsize))
        tile_rows = min((target_rows // sub_min) * sub_min, rows)
        if tile_rows == rows and rows >= 2 * sub_min:
            # Keep at least 2 grid steps so v7x's two TensorCores both
            # contribute DMA bandwidth (neutral on v5e/v6e).
            tile_rows = (((rows + 1) // 2 + sub_min - 1) // sub_min) * sub_min

    grid = (pl.cdiv(rows, tile_rows),)  # partial last block handled by Pallas

    out2d = pl.pallas_call(
        _copy_kernel,
        out_shape=jax.ShapeDtypeStruct((rows, lane), flat.dtype),
        grid_spec=pltpu.PrefetchScalarGridSpec(
            num_scalar_prefetch=0,
            grid=grid,
            in_specs=[pl.BlockSpec((tile_rows, lane), lambda i: (i, 0))],
            out_specs=pl.BlockSpec((tile_rows, lane), lambda i: (i, 0)),
        ),
        compiler_params=pltpu.CompilerParams(
            dimension_semantics=("parallel",),
            vmem_limit_bytes=32 * 1024 * 1024,
        ),
        cost_estimate=pl.CostEstimate(
            flops=0, transcendentals=0, bytes_accessed=2 * n * itemsize),
    )(x2d)

    return out2d.reshape(-1)  # metadata-only


def reshape_forward(x: jax.Array, shape) -> jax.Array:
    """Equivalent of Reshape(shape).forward(x) == x.view(shape)."""
    # Resolve a single -1 dimension like torch.view does.
    shape = list(shape)
    total = x.size
    if -1 in shape:
        idx = shape.index(-1)
        known = 1
        for j, s in enumerate(shape):
            if j != idx:
                known *= s
        assert known != 0 and total % known == 0, "invalid shape for view"
        shape[idx] = total // known
    prod = 1
    for s in shape:
        prod *= s
    assert prod == total, "view shape must preserve number of elements"

    flat = x.reshape(-1)              # row-major flatten (matches NCHW contiguous)
    copied = _pallas_flat_copy(flat)  # hot path: roofline-tuned Pallas copy
    return copied.reshape(tuple(shape))  # metadata-only glue


if __name__ == "__main__":
    key = jax.random.PRNGKey(0)
    # Small NCHW-style input, e.g. a GAN feature map: (batch=2, C=4, H=16, W=16)
    x = jax.random.normal(key, (2, 4, 16, 16), dtype=jnp.float32)

    # Typical GAN usage: flatten spatial dims -> (batch, C*H*W)
    target_shape = (2, 4 * 16 * 16)
    y = reshape_forward(x, target_shape)
    jax.block_until_ready(y)

    # Correctness check against plain reshape (same semantics as torch .view)
    ref = x.reshape(target_shape)
    assert y.shape == ref.shape and y.dtype == ref.dtype
    assert bool(jnp.all(y == ref))

    # Also exercise a -1 dimension, like Reshape((-1, 256))
    y2 = reshape_forward(x, (-1, 256))
    jax.block_until_ready(y2)
    assert bool(jnp.all(y2 == x.reshape(-1, 256)))

    # Narrow dtype path (dtype-aware sublane handling), still an exact copy.
    xb = x.astype(jnp.bfloat16)
    y3 = reshape_forward(xb, (8, -1))
    jax.block_until_ready(y3)
    assert y3.dtype == jnp.bfloat16 and y3.shape == (8, 256)
    assert bool(jnp.all(y3 == xb.reshape(8, -1)))

    print("KERNEL_OK")
</pallas_src>

<mosaic_0001>
module attributes {stable_mosaic.version = 11 : i64} {
  func.func @_copy_kernel(%arg0: i32, %arg1: memref<1x2048xf32, #tpu.memory_space<vmem>>, %arg2: memref<1x2048xf32, #tpu.memory_space<vmem>>) attributes {dimension_semantics = [#tpu.dimension_semantics<parallel>], iteration_bounds = array<i64: 1>, scalar_prefetch = 0 : i64, scratch_operands = 0 : i64, tpu.core_type = #tpu.core_type<tc>, window_params = [{transform_indices = @transform_0, window_bounds = array<i64: 1, 2048>}, {transform_indices = @transform_1, window_bounds = array<i64: 1, 2048>}]} {
    %c0 = arith.constant 0 : index
    %c0_0 = arith.constant 0 : index
    %0 = vector.load %arg1[%c0, %c0_0] : memref<1x2048xf32, #tpu.memory_space<vmem>>, vector<1x2048xf32>
    %c0_1 = arith.constant 0 : index
    %c0_2 = arith.constant 0 : index
    %1 = vector.load %arg2[%c0_1, %c0_2] : memref<1x2048xf32, #tpu.memory_space<vmem>>, vector<1x2048xf32>
    tpu.vector_store %arg2[%c0_1, %c0_2], %0 {strides = array<i32>} : memref<1x2048xf32, #tpu.memory_space<vmem>>, vector<1x2048xf32>,
    return
  }
  func.func @transform_0(%arg0: i32) -> (i32, i32) {
    %c0_i32 = arith.constant 0 : i32
    %c0_i32_0 = arith.constant 0 : i32
    return %arg0, %c0_i32 : i32, i32
  }
  func.func @transform_1(%arg0: i32) -> (i32, i32) {
    %c0_i32 = arith.constant 0 : i32
    %c0_i32_0 = arith.constant 0 : i32
    return %arg0, %c0_i32 : i32, i32
  }
}

</mosaic_0001>

<bundles_post_ra>
// kernel: tpu_custom_call.1
= control target key start
LH: loop header
LB: loop body
LE: loop exit
PB: predicated region body
PF: predicated region fallthrough
CT: control target
= control target key end

     0   :  { %6 = vsyncpa [#allocation3], 0  ;;  %s126_s0 = inlined_call_operand.hbm [shape: f32[1,2048], index: 0, kind: input, shape index: {}]   ;;  %s127_s1 = inlined_call_operand.hbm [shape: f32[1,2048], index: 1, kind: output, shape index: {}]  }
   0x1   :  { %7 = vsyncpa [#allocation4], 0  ;;  %s90_s6 = smov [#allocation2]   ;;  %s42_s10 = scalar_lea.hbm %s126_s0, 256 }
   0x2   :  { %s14_s7 = sshll.u32 %s90_s6, 4  ;;  %p43_p0 = scmp.ne.s32.totalorder %s126_s0, %s42_s10  ;;  %s15_s7 = int_to_ptr.vmem [resolvable:$true] %s14_s7 }
   0x3   :  { %p46_p1 = scmp.lt.u32.totalorder %s42_s10, %s126_s0 }
   0x5   :  { %p48_p2 = pnand %p46_p1, %p43_p0 }
   0x7   :  { %51 = shalt.err (!%p48_p2)
}
   0x8   :  { %s52_s15 = scalar_lea.vmem %s15_s7, 256  ;;  %p57_p4 = scmp.lt.s32.totalorder %s15_s7, %s15_s7 }
   0x9   :  { %p53_p3 = scmp.ne.s32.totalorder %s15_s7, %s52_s15  ;;  %p58_p5 = scmp.lt.s32.totalorder %s52_s15, %s52_s15 }
   0xb   :  { %p59_p6 = por %p58_p5, %p57_p4 }
   0xd   :  { %p60_p7 = pnand %p59_p6, %p53_p3 }
   0xf   :  { %63 = shalt.err (!%p60_p7)
}
  0x10   :  { %17 = dma.hbm_to_vmem [thread:$0]  %s126_s0, 256, %s15_s7, [#allocation3]  }
  0x11   :  { %86 = dma.done.wait [#allocation3], 256  }
  0x12   :  { %87 = vsyncadd [#allocation3], 4294967040  ;;  %s91_s18 = smov [#allocation5]   ;;  %v21_v0 = vld [vmem:[#allocation2] sm:$0xff]  ;;  %v22_v1 = vld [vmem:[#allocation2 + $0x8] sm:$0xff] }
  0x13   :  { %s31_s19 = sshll.u32 %s91_s18, 4  ;;  %23 = vst [vmem:[#allocation5] sm:$0xff] %v21_v0  ;;  %24 = vst [vmem:[#allocation5 + $0x8] sm:$0xff] %v22_v1  ;;  %s32_s19 = int_to_ptr.vmem [resolvable:$true] %s31_s19 }
  0x14   :  { %s64_s20 = scalar_lea.vmem %s32_s19, 256  ;;  %p69_p9 = scmp.lt.s32.totalorder %s32_s19, %s32_s19 }
  0x15   :  { %p65_p8 = scmp.ne.s32.totalorder %s32_s19, %s64_s20  ;;  %p70_p10 = scmp.lt.s32.totalorder %s64_s20, %s64_s20 }
  0x17   :  { %p71_p11 = por %p70_p10, %p69_p9 }
  0x19   :  { %p72_p12 = pnand %p71_p11, %p65_p8 }
  0x1b   :  { %75 = shalt.err (!%p72_p12)
}
  0x1c   :  { %s76_s0 = scalar_lea.hbm %s127_s1, 256 }
  0x1d   :  { %p77_p13 = scmp.ne.s32.totalorder %s127_s1, %s76_s0  ;;  %p80_p0 = scmp.lt.u32.totalorder %s76_s0, %s127_s1 }
  0x1f   :  { %p82_p1 = pnand %p80_p0, %p77_p13 }
  0x21   :  { %85 = shalt.err (!%p82_p1)
}
  0x22   :  { %34 = dma.vmem_to_hbm [thread:$0]  %s32_s19, 256, %s127_s1, [#allocation4]  }
  0x23   :  { %88 = dma.done.wait [#allocation4], 256  }
  0x24   :  { %89 = vsyncadd [#allocation4], 4294967040 }
  0x25   :  { %38 = vsyncpa [#allocation3], 1 }
  0x26   :  { %39 = vsyncpa [#allocation4], 1 }

</bundles_post_ra>
